<compile_context>
chip_gen: v5e
topology: v5e:2x2
jax: 0.10.0
libtpu: 0.0.40
codegen_flags: <defaults>
</compile_context>

<pallas_src>
import jax
import jax.numpy as jnp
from jax.experimental import pallas as pl
from jax.experimental.pallas import tpu as pltpu


def _decision_head_kernel(x_ref, w_ref, b_ref, o_ref):
    """One M-tile of sigmoid(x @ w^T + b).

    x_ref: (TILE_M, H) input rows (native dtype), VMEM
    w_ref: (1, H)      linear weight (same dtype as x), VMEM (resident)
    b_ref: (1, 1)      bias, f32, SMEM
    o_ref: (1, TILE_M) lane-dense output row, VMEM
    """
    # Contract the hidden dim of both operands (attention-score style "NT"
    # matmul) so the MXU emits a lane-dense (1, TILE_M) row directly.
    logits = jax.lax.dot_general(
        w_ref[...], x_ref[...],
        dimension_numbers=(((1,), (1,)), ((), ())),
        preferred_element_type=jnp.float32)            # (1, TILE_M) f32
    logits = logits + b_ref[0, 0]
    o_ref[...] = jax.nn.sigmoid(logits).astype(o_ref.dtype)


def _round_up(x, m):
    return (x + m - 1) // m * m


def decision_head(x, weight, bias, *, tile_m=None,
                  vmem_limit_bytes=32 * 1024 * 1024):
    """DecisionHead forward: sigmoid(Linear(H->1)(x)).squeeze(-1).

    x: (B, T, H) float dtype; weight: (1, H); bias: (1,). Returns (B, T).
    """
    B, T, H = x.shape
    M = B * T
    out_dtype = x.dtype

    x2d = x.reshape(M, H)                        # contiguous view, no copy
    w2d = weight.reshape(1, H).astype(x2d.dtype) # tiny; match MXU operand dtype
    b2d = bias.reshape(1, 1).astype(jnp.float32)

    # --- tile sizing: ~8 MiB per x tile (lanes pad to 128 in VMEM) ---
    h_pad = _round_up(H, 128)
    bytes_per_row = h_pad * x2d.dtype.itemsize
    x_tile_budget = 8 * 1024 * 1024              # 16 MiB double-buffered, fits all gens
    cap = max(128, (x_tile_budget // bytes_per_row) // 128 * 128)
    if tile_m is not None:
        cap = min(cap, max(128, _round_up(tile_m, 128)))

    if M <= cap:
        # Whole problem as one full-extent block: always layout-legal, no
        # padding or masking needed, nothing to pipeline.
        tm, n_tiles = M, 1
    else:
        # Row-tiled grid; pl.cdiv + boundary masking handles a ragged last
        # tile, so we never materialize a padded copy of x in HBM.
        tm = cap
        n_tiles = pl.cdiv(M, tm)

    out = pl.pallas_call(
        _decision_head_kernel,
        out_shape=jax.ShapeDtypeStruct((1, M), out_dtype),
        grid=(n_tiles,),
        in_specs=[
            pl.BlockSpec((tm, H), lambda i: (i, 0)),            # x: streamed row tiles
            pl.BlockSpec((1, H), lambda i: (0, 0)),             # w: resident
            pl.BlockSpec(memory_space=pltpu.MemorySpace.SMEM),  # bias scalar
        ],
        out_specs=pl.BlockSpec((1, tm), lambda i: (0, i)),      # lane-dense output row
        compiler_params=pltpu.CompilerParams(
            dimension_semantics=("parallel",),
            vmem_limit_bytes=vmem_limit_bytes),
    )(x2d, w2d, b2d)

    return out[0, :].reshape(B, T)


if __name__ == "__main__":
    key = jax.random.PRNGKey(0)
    keys = jax.random.split(key, 9)
    (k_x, k_w, k_b, k_x2, k_w2, k_b2, k_x3, k_w3, k_b3) = keys

    # Case 1: module-faithful small shapes/init (f32, bias ~ N(-20, 0.1)).
    B, T, H = 2, 8, 32
    x = jax.random.normal(k_x, (B, T, H), dtype=jnp.float32)
    weight = jax.random.normal(k_w, (1, H), dtype=jnp.float32) * 0.1
    bias = -20.0 + 0.1 * jax.random.normal(k_b, (1,), dtype=jnp.float32)

    out = decision_head(x, weight, bias)
    jax.block_until_ready(out)

    ref = jax.nn.sigmoid(
        jnp.einsum("bth,oh->bto", x, weight,
                   precision=jax.lax.Precision.HIGHEST) + bias)[..., 0]
    assert out.shape == (B, T)
    assert out.dtype == x.dtype
    assert jnp.allclose(out, ref, atol=1e-8, rtol=1e-4)

    # Case 2: bf16 activations (native-dtype DMA path), non-saturated bias.
    B2, T2, H2 = 2, 8, 256
    x2 = jax.random.normal(k_x2, (B2, T2, H2), dtype=jnp.float32).astype(jnp.bfloat16)
    w2 = (jax.random.normal(k_w2, (1, H2), dtype=jnp.float32) * 0.05).astype(jnp.bfloat16)
    b2 = 0.1 * jax.random.normal(k_b2, (1,), dtype=jnp.float32)

    out2 = decision_head(x2, w2, b2)
    jax.block_until_ready(out2)

    ref2 = jax.nn.sigmoid(
        jnp.einsum("bth,oh->bto", x2.astype(jnp.float32), w2.astype(jnp.float32),
                   precision=jax.lax.Precision.HIGHEST) + b2)[..., 0]
    assert out2.shape == (B2, T2)
    assert jnp.allclose(out2.astype(jnp.float32), ref2, atol=2e-2, rtol=3e-2)

    # Case 3: exercise the tiled path with a ragged final tile (M=150, tile=128).
    B3, T3, H3 = 3, 50, 64
    x3 = jax.random.normal(k_x3, (B3, T3, H3), dtype=jnp.float32)
    w3 = jax.random.normal(k_w3, (1, H3), dtype=jnp.float32) * 0.05
    b3 = 0.1 * jax.random.normal(k_b3, (1,), dtype=jnp.float32)

    out3 = decision_head(x3, w3, b3, tile_m=128)
    jax.block_until_ready(out3)

    ref3 = jax.nn.sigmoid(
        jnp.einsum("bth,oh->bto", x3, w3,
                   precision=jax.lax.Precision.HIGHEST) + b3)[..., 0]
    assert out3.shape == (B3, T3)
    assert jnp.allclose(out3, ref3, atol=1e-6, rtol=1e-5)

    print("KERNEL_OK")
</pallas_src>

<mosaic_0001>
module attributes {stable_mosaic.version = 11 : i64} {
  func.func @_decision_head_kernel(%arg0: i32, %arg1: memref<16x32xf32, #tpu.memory_space<vmem>>, %arg2: memref<1x32xf32, #tpu.memory_space<vmem>>, %arg3: memref<1x1xf32, #tpu.memory_space<smem>>, %arg4: memref<1x16xf32, #tpu.memory_space<vmem>>) attributes {dimension_semantics = [#tpu.dimension_semantics<parallel>], iteration_bounds = array<i64: 1>, scalar_prefetch = 0 : i64, scratch_operands = 0 : i64, tpu.core_type = #tpu.core_type<tc>, window_params = [{transform_indices = @transform_0, window_bounds = array<i64: 16, 32>}, {pipeline_mode = #tpu.pipeline_mode<synchronous>, transform_indices = @transform_1, window_bounds = array<i64: 1, 32>}, {transform_indices = @transform_2, window_bounds = array<i64: 1, 1>}, {transform_indices = @transform_3, window_bounds = array<i64: 1, 16>}]} {
    %c0 = arith.constant 0 : index
    %c0_0 = arith.constant 0 : index
    %0 = vector.load %arg2[%c0, %c0_0] : memref<1x32xf32, #tpu.memory_space<vmem>>, vector<1x32xf32>
    %c0_1 = arith.constant 0 : index
    %c0_2 = arith.constant 0 : index
    %1 = vector.load %arg1[%c0_1, %c0_2] : memref<16x32xf32, #tpu.memory_space<vmem>>, vector<16x32xf32>
    %cst = arith.constant dense<0.000000e+00> : vector<1x16xf32>
    %2 = tpu.matmul %0, %1, %cst {dimension_numbers = #tpu.dot_dimension_numbers<[1], [1], [0], [0], [0, 0, 1, 0], [], []>} : vector<1x32xf32>, vector<16x32xf32>, vector<1x16xf32> -> vector<1x16xf32>
    %c0_3 = arith.constant 0 : index
    %c0_4 = arith.constant 0 : index
    %3 = memref.load %arg3[%c0_3, %c0_4] : memref<1x1xf32, #tpu.memory_space<smem>>
    %4 = vector.broadcast %3 : f32 to vector<1x16xf32>
    %5 = arith.addf %2, %4 : vector<1x16xf32>
    %6 = arith.negf %5 : vector<1x16xf32>
    %7 = math.exp %6 : vector<1x16xf32>
    %cst_5 = arith.constant 1.000000e+00 : f32
    %8 = vector.broadcast %cst_5 : f32 to vector<1x16xf32>
    %9 = arith.addf %8, %7 : vector<1x16xf32>
    %10 = arith.divf %8, %9 : vector<1x16xf32>
    %c0_6 = arith.constant 0 : index
    %c0_7 = arith.constant 0 : index
    %11 = vector.load %arg4[%c0_6, %c0_7] : memref<1x16xf32, #tpu.memory_space<vmem>>, vector<1x16xf32>
    tpu.vector_store %arg4[%c0_6, %c0_7], %10 {strides = array<i32>} : memref<1x16xf32, #tpu.memory_space<vmem>>, vector<1x16xf32>,
    return
  }
  func.func @transform_0(%arg0: i32) -> (i32, i32) {
    %c0_i32 = arith.constant 0 : i32
    %c0_i32_0 = arith.constant 0 : i32
    return %arg0, %c0_i32 : i32, i32
  }
  func.func @transform_1(%arg0: i32) -> (i32, i32) {
    %c0_i32 = arith.constant 0 : i32
    %c0_i32_0 = arith.constant 0 : i32
    %c0_i32_1 = arith.constant 0 : i32
    return %c0_i32, %c0_i32_0 : i32, i32
  }
  func.func @transform_2(%arg0: i32) -> (i32, i32) {
    %c0_i32 = arith.constant 0 : i32
    %c0_i32_0 = arith.constant 0 : i32
    %c0_i32_1 = arith.constant 0 : i32
    return %c0_i32, %c0_i32_0 : i32, i32
  }
  func.func @transform_3(%arg0: i32) -> (i32, i32) {
    %c0_i32 = arith.constant 0 : i32
    %c0_i32_0 = arith.constant 0 : i32
    return %c0_i32, %arg0 : i32, i32
  }
}

</mosaic_0001>

<bundles_post_ra>
// kernel: tpu_custom_call.1
= control target key start
LH: loop header
LB: loop body
LE: loop exit
PB: predicated region body
PF: predicated region fallthrough
CT: control target
= control target key end

     0   :  { %9 = vsyncpa [#allocation4], 0  ;;  %s205_s0 = inlined_call_operand.hbm [shape: f32[16,32], index: 0, kind: input, shape index: {}]   ;;  %s206_s1 = inlined_call_operand.vmem [shape: f32[1,32], index: 1, kind: input, shape index: {}]   ;;  %s207_s2 = inlined_call_operand.<no memory space> [shape: f32[1,1], index: 2, kind: input, shape index: {}]   ;;  %s208_s3 = inlined_call_operand.hbm [shape: f32[1,16], index: 3, kind: output, shape index: {}]  }
   0x1   :  { %10 = vsyncpa [#allocation5], 0  ;;  %s15_s14 = sshll.u32 %s205_s0, 4  ;;  %s169_s15 = smov [#allocation3]   ;;  %s16_s14 = int_to_ptr.hbm [resolvable:$true] %s15_s14 }
   0x2   :  { %s17_s16 = sshll.u32 %s169_s15, 4  ;;  %s170_s17 = smov 128   ;;  %s18_s16 = int_to_ptr.vmem [resolvable:$true] %s17_s16 }
   0x3   :  { %s171_s18 = smov 8  }
   0x4   :  { %23 = dma.hbm_to_vmem [thread:$0]  %s16_s14, 256, %s18_s16, [#allocation4], %s170_s17, %s170_s17, %s171_s18  }
   0x5   :  { %165 = dma.done.wait [#allocation4], 256  }
   0x6   :  { %166 = vsyncadd [#allocation4], 4294967040  ;;  %vm37_vm0 = vcmask 261120   ;;  %v34_v0 = vld [vmem:[#allocation3 + $0x8] sm:$0xff]  ;;  %v33_v1 = vld [vmem:[#allocation3] sm:$0xff]  ;;  %v36_v3 = vstv %s207_s2  ;;  %s95_s2 = sshll.u32 %s208_s3, 4  ;;  %s96_s2 = int_to_ptr.hbm [resolvable:$true] %s95_s2 }
   0x7   :  { %105 = vmatpush.xpose.msk.msra.mxu0 %vm37_vm0, %v34_v0  ;;  %v32_v2 = vld [vmem:[%s206_s1] sm:$0x1]  ;;  %s172_s1 = smov [#allocation6]   ;;  %vm86_vm4 = vcmask 122880  }
   0x8   :  { %s93_s22 = sshll.u32 %s172_s1, 4  ;;  %s94_s22 = int_to_ptr.vmem [resolvable:$true] %s93_s22 }
   0xb   :  { %106 = vmatpush.xpose.msk.msra.mxu0 %vm37_vm0, %v33_v1 }
   0xe   :  { %107 = vmatmul.msk.f32.vlgmr.msra.gmra.mxu0 %vm37_vm0, %v32_v2 }
  0x8b   :  { %v64_v4 = vpop.f32.mrf.mxu0 }
  0x8c   :  { %v65_v5 = vadd.f32 %v64_v4, %v36_v3 }
  0x8e   :  { %v108_v6 = vmul.f32 -1.442695, %v65_v5 }
  0x90   :  { %113 = vpow2.f32 %v108_v6 }
  0x96   :  { %v114_v7 = vpop.eup %113 }
  0x97   :  { %v70_v8 = vadd.f32 1.0, %v114_v7 }
  0x99   :  { %115 = vrcp.f32 %v70_v8  ;;  %v82_v12 = vand.u32 2147483648, %v70_v8  ;;  %v80_v14 = vand.u32 2147483647, %v70_v8  ;;  %vm76_vm2 = vweird.f32 %v70_v8 }
  0x9b   :  { %v83_v16 = vor.u32 1.1754944e-38, %v82_v12  ;;  %vm81_vm5 = vcmp.eq.f32.partialorder %v80_v14, 8.507059e+37 }
  0x9f   :  { %v116_v9 = vpop.eup %115 }
  0xa0   :  { %v72_v10 = vmul.f32 %v116_v9, %v70_v8  ;;  %vm77_vm1 = vweird.f32 %v116_v9 }
  0xa1   :  { %vm78_vm3 = vmor %vm76_vm2, %vm77_vm1 }
  0xa2   :  { %v73_v11 = vsub.f32 1.0, %v72_v10 }
  0xa4   :  { %v74_v13 = vmul.f32 %v116_v9, %v73_v11 }
  0xa6   :  { %v75_v15 = vadd.f32 %v116_v9, %v74_v13 }
  0xa8   :  { %v79_v17 = vsel %vm78_vm3, %v116_v9, %v75_v15 }
  0xa9   :  { %v84_v18 = vsel %vm81_vm5, %v83_v16, %v79_v17 }
  0xaa   :  { %87 = vst.msk [vmem:[#allocation6] sm:$0x1] %vm86_vm4, %v84_v18 }
  0xab   :  { %98 = dma.vmem_to_hbm [thread:$0]  %s94_s22, 16, %s96_s2, [#allocation5]  }
  0xac   :  { %167 = dma.done.wait [#allocation5], 16  }
  0xad   :  { %168 = vsyncadd [#allocation5], 4294967280 }
  0xae   :  { %103 = vsyncpa [#allocation4], 1 }
  0xaf   :  { %104 = vsyncpa [#allocation5], 1 }

</bundles_post_ra>
